<compile_context>
chip_gen: v5e
topology: v5e:2x2
jax: 0.10.0
libtpu: 0.0.40
codegen_flags: <defaults>
</compile_context>

<pallas_src>
import functools
import math

import jax
import jax.numpy as jnp
from jax.experimental import pallas as pl
from jax.experimental.pallas import tpu as pltpu


_VMEM_CAP_BYTES = 56 << 20     # keep headroom below v7x's 64 MiB physical VMEM


def _vmem_limit(block_bytes, scratch_bytes=0):
    """Scoped-VMEM budget: double-buffered pipeline blocks + scratch + margin."""
    est = 2 * int(sum(block_bytes)) + int(scratch_bytes)
    est = int(est * 1.5) + (2 << 20)            # compiler-temp headroom
    assert est <= _VMEM_CAP_BYTES, f"VMEM budget exceeded: {est} bytes"
    return max(est, 16 << 20)


def _pad_axis(a, target, axis):
    cur = a.shape[axis]
    if cur == target:
        return a
    pad = [(0, 0)] * a.ndim
    pad[axis] = (0, target - cur)
    return jnp.pad(a, pad)


# ----------------------------- kernels --------------------------------------


def _edge_agg_kernel(hts_ref, x_ref, scale_ref, xe_ref, acc_ref):
    """Phase 1: Xe[tile_m, C] = scale * sum_n (H^T tile @ X tile).

    H^T is stored int8 (exact 0/1) and upcast to bf16 at the MXU; the per-edge
    mean + degE scale is applied in f32 on the accumulator at finalize.
    """
    ni = pl.program_id(1)

    @pl.when(ni == 0)
    def _init():
        acc_ref[...] = jnp.zeros_like(acc_ref)

    acc_ref[...] += jnp.dot(hts_ref[...].astype(jnp.bfloat16), x_ref[...],
                            preferred_element_type=jnp.float32)

    @pl.when(ni == pl.num_programs(1) - 1)
    def _finish():
        xe_ref[...] = (acc_ref[...] * scale_ref[...]).astype(xe_ref.dtype)


def _vertex_kernel(h_ref, xe_ref, degv_ref, x0_ref, w_ref, gamma_ref, bln_ref,
                   o_ref, acc_ref, *, alpha, beta, ln_eps, use_norm):
    """Phase 2: Xv accumulation over M tiles; LN / alpha / beta / W epilogue."""
    mj = pl.program_id(1)

    @pl.when(mj == 0)
    def _init():
        acc_ref[...] = jnp.zeros_like(acc_ref)

    acc_ref[...] += jnp.dot(h_ref[...].astype(jnp.bfloat16), xe_ref[...],
                            preferred_element_type=jnp.float32)

    @pl.when(mj == pl.num_programs(1) - 1)
    def _finish():
        # degv2 already folds the residual doubling (2 * degV).
        x = acc_ref[...] * degv_ref[...]                       # [TN, C] f32
        if use_norm:
            mean = jnp.mean(x, axis=1, keepdims=True)
            xc = x - mean
            var = jnp.mean(xc * xc, axis=1, keepdims=True)
            inv = jax.lax.rsqrt(var + ln_eps)                  # EUP slot
            x = xc * inv * gamma_ref[...] + bln_ref[...]
        xi = (1.0 - alpha) * x + alpha * x0_ref[...]
        # w_ref already holds beta * W (folded outside the kernel).
        xiw = jnp.dot(xi.astype(jnp.bfloat16), w_ref[...],
                      preferred_element_type=jnp.float32)
        o_ref[...] = ((1.0 - beta) * xi + xiw).astype(o_ref.dtype)


# ----------------------------- wrapper ---------------------------------------


def unigcnii_conv(X, W, H, degE, degV, X0, alpha, beta, ln_gamma, ln_beta,
                  *, ln_eps=1e-5, use_norm=True, tile_n=256, tile_m=128):
    """X, X0: [N, C]; W: [C, C] (stored as in->out); H: [N, M] dense 0/1
    incidence; degE: [M, 1]; degV: [N, 1]; alpha/beta: scalars."""
    N, cin = X.shape
    cout = W.shape[1]
    M = H.shape[1]
    # TODO(synk): res_linear branch (in_features != out_features) not implemented;
    # the PyTorch module's `X + residual` shape-mismatches in that branch anyway.
    assert cin == cout, "only in_features == out_features supported"

    alpha = float(alpha)
    beta = float(beta)
    ln_eps = float(ln_eps)

    n_pad = pl.cdiv(N, tile_n) * tile_n
    m_pad = pl.cdiv(M, tile_m) * tile_m
    n_tiles = n_pad // tile_n
    m_tiles = m_pad // tile_m

    # ---- graph-static preprocessing (amortized across layers / steps) ----
    cnt_e = jnp.sum(H, axis=0)                                   # [M] edge sizes
    col_scale = jnp.where(cnt_e > 0,
                          degE.reshape(-1) / jnp.maximum(cnt_e, 1.0),
                          0.0).astype(jnp.float32)               # mean + degE
    col_scale = _pad_axis(col_scale, m_pad, 0).reshape(m_pad, 1)  # zero pad cols

    h_pad = _pad_axis(_pad_axis(H, n_pad, 0), m_pad, 1)           # [Np, Mp] 0/1
    h_i8 = h_pad.astype(jnp.int8)                                 # exact, narrow
    hts_i8 = jnp.transpose(h_pad).astype(jnp.int8)                # [Mp, Np]

    x_b = _pad_axis(X, n_pad, 0).astype(jnp.bfloat16)
    x0_f = _pad_axis(X0, n_pad, 0).astype(jnp.float32)
    degv2 = _pad_axis(2.0 * degV.reshape(N, 1).astype(jnp.float32), n_pad, 0)
    gamma2 = ln_gamma.reshape(1, cout).astype(jnp.float32)
    bln2 = ln_beta.reshape(1, cout).astype(jnp.float32)
    w_b = (beta * W).astype(jnp.bfloat16)                         # fold beta

    # ---- Phase 1: Xe[Mp, C] = col_scale * (H^T @ X), reduced over N tiles ----
    p1_blocks = [tile_m * tile_n * 1,       # H^T tile (int8)
                 tile_n * cin * 2,          # X tile (bf16)
                 tile_m * 512,              # col_scale tile (lane-padded f32)
                 tile_m * cin * 2]          # Xe output tile (bf16)
    xe = pl.pallas_call(
        _edge_agg_kernel,
        out_shape=jax.ShapeDtypeStruct((m_pad, cin), jnp.bfloat16),
        grid_spec=pltpu.PrefetchScalarGridSpec(
            num_scalar_prefetch=0,
            grid=(m_tiles, n_tiles),
            in_specs=[
                pl.BlockSpec((tile_m, tile_n), lambda mi, ni: (mi, ni)),  # H^T
                pl.BlockSpec((tile_n, cin), lambda mi, ni: (ni, 0)),      # X
                pl.BlockSpec((tile_m, 1), lambda mi, ni: (mi, 0)),        # scale
            ],
            out_specs=pl.BlockSpec((tile_m, cin), lambda mi, ni: (mi, 0)),
            scratch_shapes=[pltpu.VMEM((tile_m, cin), jnp.float32)],
        ),
        compiler_params=pltpu.CompilerParams(
            dimension_semantics=("parallel", "arbitrary"),
            vmem_limit_bytes=_vmem_limit(p1_blocks, tile_m * cin * 4)),
        cost_estimate=pl.CostEstimate(
            flops=2 * m_pad * n_pad * cin,
            transcendentals=0,
            bytes_accessed=(m_pad * n_pad                # H^T int8
                            + m_tiles * n_pad * cin * 2  # X re-read per M tile
                            + m_pad * cin * 2)),
    )(hts_i8, x_b, col_scale)

    # ---- Phase 2: per N-row tile — Xv over M tiles, LN, mixing, W ----
    kernel2 = functools.partial(_vertex_kernel, alpha=alpha, beta=beta,
                                ln_eps=ln_eps, use_norm=use_norm)
    out_dtype = X.dtype
    out_bytes = jnp.dtype(out_dtype).itemsize
    p2_blocks = [tile_n * tile_m * 1,       # H tile (int8)
                 tile_m * cin * 2,          # Xe tile (bf16)
                 tile_n * 512,              # degV tile (lane-padded f32)
                 tile_n * cin * 4,          # X0 tile (f32)
                 cin * cout * 2,            # W (bf16, resident)
                 2 * cout * 32,             # gamma / beta rows
                 tile_n * cout * out_bytes]  # output tile
    out = pl.pallas_call(
        kernel2,
        out_shape=jax.ShapeDtypeStruct((n_pad, cout), out_dtype),
        grid_spec=pltpu.PrefetchScalarGridSpec(
            num_scalar_prefetch=0,
            grid=(n_tiles, m_tiles),
            in_specs=[
                pl.BlockSpec((tile_n, tile_m), lambda i, mj: (i, mj)),    # H
                pl.BlockSpec((tile_m, cin), lambda i, mj: (mj, 0)),       # Xe
                pl.BlockSpec((tile_n, 1), lambda i, mj: (i, 0)),          # degV*2
                pl.BlockSpec((tile_n, cin), lambda i, mj: (i, 0)),        # X0
                pl.BlockSpec((cin, cout), lambda i, mj: (0, 0)),          # beta*W
                pl.BlockSpec((1, cout), lambda i, mj: (0, 0)),            # gamma
                pl.BlockSpec((1, cout), lambda i, mj: (0, 0)),            # LN beta
            ],
            out_specs=pl.BlockSpec((tile_n, cout), lambda i, mj: (i, 0)),
            scratch_shapes=[pltpu.VMEM((tile_n, cout), jnp.float32)],
        ),
        compiler_params=pltpu.CompilerParams(
            dimension_semantics=("parallel", "arbitrary"),
            vmem_limit_bytes=_vmem_limit(p2_blocks, tile_n * cout * 4)),
        cost_estimate=pl.CostEstimate(
            flops=2 * n_pad * m_pad * cin + 2 * n_pad * cin * cout
                  + 10 * n_pad * cout,
            transcendentals=n_pad,
            bytes_accessed=(n_pad * m_pad                # H int8
                            + n_tiles * m_pad * cin * 2  # Xe re-read per N tile
                            + n_pad * cin * 4 + n_pad * cout * out_bytes
                            + cin * cout * 2)),
    )(h_i8, xe, degv2, x0_f, w_b, gamma2, bln2)

    return out[:N] if n_pad != N else out


# ----------------------------- reference -------------------------------------


def _reference(X, W, X0, vertex, edges, num_edges, degE, degV,
               alpha, beta, ln_gamma, ln_beta, ln_eps=1e-5):
    """Plain-JAX reference with real gather/segment ops (PyTorch semantics)."""
    N = X.shape[0]
    Xve = X[vertex]
    sums = jax.ops.segment_sum(Xve, edges, num_segments=num_edges)
    cnts = jax.ops.segment_sum(jnp.ones((vertex.shape[0],), X.dtype), edges,
                               num_segments=num_edges)
    Xe = sums / jnp.maximum(cnts, 1.0)[:, None]        # first_aggregate='mean'
    Xe = Xe * degE
    Xev = Xe[edges]
    Xv = jax.ops.segment_sum(Xev, vertex, num_segments=N)
    Xv = Xv * degV
    Xr = Xv + Xv                                        # residual = X (in == out)
    mean = jnp.mean(Xr, axis=1, keepdims=True)
    var = jnp.mean((Xr - mean) ** 2, axis=1, keepdims=True)
    Xn = (Xr - mean) / jnp.sqrt(var + ln_eps) * ln_gamma[None, :] + ln_beta[None, :]
    Xi = (1.0 - alpha) * Xn + alpha * X0
    return (1.0 - beta) * Xi + beta * (Xi @ W)


# ----------------------------- demo / test -----------------------------------


if __name__ == "__main__":
    N = 384             # vertices  (pads to 512 -> 2 row tiles of 256)
    C = 128             # in_features == out_features (lane-dense)
    M = 200             # hyperedges (pads to 256 -> 2 M tiles of 128)
    EDGE_SIZE = 4       # vertices per hyperedge

    key = jax.random.PRNGKey(0)
    kx, kw, k0 = jax.random.split(key, 3)

    X = jax.random.normal(kx, (N, C), dtype=jnp.float32)
    X0 = jax.random.normal(k0, (N, C), dtype=jnp.float32)
    # nn.Linear(C, C, bias=False) with xavier_uniform_, stored as [in, out].
    bound = math.sqrt(6.0 / (C + C))
    W = jax.random.uniform(kw, (C, C), dtype=jnp.float32, minval=-bound, maxval=bound)

    alpha = 0.1          # nn.Parameter(torch.tensor(0.1))
    beta_p = 0.5         # nn.Parameter(torch.tensor(0.5))
    ln_eps = 1e-5
    ln_gamma = jnp.ones((C,), dtype=jnp.float32)    # LayerNorm default init
    ln_beta = jnp.zeros((C,), dtype=jnp.float32)

    # Hyperedge incidence: edge e touches vertices {3e, 3e+17, 3e+34, 3e+51} mod N
    # (distinct within each edge, no duplicate (v, e) pairs).
    e_ids = jnp.repeat(jnp.arange(M, dtype=jnp.int32), EDGE_SIZE)
    offs = jnp.arange(EDGE_SIZE, dtype=jnp.int32) * 17
    v_ids = (((3 * jnp.arange(M, dtype=jnp.int32))[:, None] + offs[None, :])
             .reshape(-1) % N).astype(jnp.int32)
    H = jnp.zeros((N, M), dtype=jnp.float32).at[v_ids, e_ids].set(1.0)

    # Precomputed degree terms (args.degE / args.degV, UniGNN-style).
    dv = jnp.sum(H, axis=1)                                        # vertex degree
    degV = (jnp.maximum(dv, 1.0) ** -0.5)[:, None]                 # [N, 1]
    cnt_e = jnp.maximum(jnp.sum(H, axis=0), 1.0)                   # edge size
    de_mean = (H.T @ degV[:, 0]) / cnt_e
    degE = (de_mean ** -0.5)[:, None]                              # [M, 1]

    out = unigcnii_conv(X, W, H, degE, degV, X0, alpha, beta_p,
                        ln_gamma, ln_beta, ln_eps=ln_eps, use_norm=True)
    out = jax.block_until_ready(out)

    ref = _reference(X, W, X0, v_ids, e_ids, M, degE, degV,
                     alpha, beta_p, ln_gamma, ln_beta, ln_eps)

    assert out.shape == (N, C)
    max_err = float(jnp.max(jnp.abs(out - ref)))
    assert jnp.allclose(out, ref, atol=3e-2, rtol=3e-2), \
        f"mismatch vs. reference (max abs err {max_err})"

    print("KERNEL_OK")
</pallas_src>

<mosaic_0001>
module attributes {stable_mosaic.version = 11 : i64} {
  func.func @_edge_agg_kernel(%arg0: i32, %arg1: i32, %arg2: memref<128x256xi8, #tpu.memory_space<vmem>>, %arg3: memref<256x128xbf16, #tpu.memory_space<vmem>>, %arg4: memref<128x1xf32, #tpu.memory_space<vmem>>, %arg5: memref<128x128xbf16, #tpu.memory_space<vmem>>, %arg6: memref<128x128xf32, #tpu.memory_space<vmem>>) attributes {dimension_semantics = [#tpu.dimension_semantics<parallel>, #tpu.dimension_semantics<arbitrary>], iteration_bounds = array<i64: 2, 2>, scalar_prefetch = 0 : i64, scratch_operands = 1 : i64, tpu.core_type = #tpu.core_type<tc>, window_params = [{transform_indices = @transform_0, window_bounds = array<i64: 128, 256>}, {transform_indices = @transform_1, window_bounds = array<i64: 256, 128>}, {transform_indices = @transform_2, window_bounds = array<i64: 128, 1>}, {transform_indices = @transform_3, window_bounds = array<i64: 128, 128>}]} {
    %c0_i32 = arith.constant 0 : i32
    %0 = arith.cmpi eq, %arg1, %c0_i32 : i32
    %1 = arith.extui %0 : i1 to i32
    %c0_i32_0 = arith.constant 0 : i32
    %2 = arith.cmpi ne, %1, %c0_i32_0 : i32
    scf.if %2 {
      %cst_9 = arith.constant 0.000000e+00 : f32
      %13 = vector.broadcast %cst_9 : f32 to vector<128x128xf32>
      %c0_10 = arith.constant 0 : index
      %c0_11 = arith.constant 0 : index
      %14 = vector.load %arg6[%c0_10, %c0_11] : memref<128x128xf32, #tpu.memory_space<vmem>>, vector<128x128xf32>
      tpu.vector_store %arg6[%c0_10, %c0_11], %13 {strides = array<i32>} : memref<128x128xf32, #tpu.memory_space<vmem>>, vector<128x128xf32>,
    } else {
    }
    %c0 = arith.constant 0 : index
    %c0_1 = arith.constant 0 : index
    %3 = vector.load %arg6[%c0, %c0_1] : memref<128x128xf32, #tpu.memory_space<vmem>>, vector<128x128xf32>
    %c0_2 = arith.constant 0 : index
    %c0_3 = arith.constant 0 : index
    %4 = vector.load %arg2[%c0_2, %c0_3] : memref<128x256xi8, #tpu.memory_space<vmem>>, vector<128x256xi8>
    %5 = arith.sitofp %4 : vector<128x256xi8> to vector<128x256xbf16>
    %c0_4 = arith.constant 0 : index
    %c0_5 = arith.constant 0 : index
    %6 = vector.load %arg3[%c0_4, %c0_5] : memref<256x128xbf16, #tpu.memory_space<vmem>>, vector<256x128xbf16>
    %cst = arith.constant dense<0.000000e+00> : vector<128x128xf32>
    %7 = tpu.matmul %5, %6, %cst {dimension_numbers = #tpu.dot_dimension_numbers<[1], [0], [0], [1], [0, 0, 1, 1], [], []>} : vector<128x256xbf16>, vector<256x128xbf16>, vector<128x128xf32> -> vector<128x128xf32>
    %8 = arith.addf %3, %7 : vector<128x128xf32>
    %c0_6 = arith.constant 0 : index
    %c0_7 = arith.constant 0 : index
    %9 = vector.load %arg6[%c0_6, %c0_7] : memref<128x128xf32, #tpu.memory_space<vmem>>, vector<128x128xf32>
    tpu.vector_store %arg6[%c0_6, %c0_7], %8 {strides = array<i32>} : memref<128x128xf32, #tpu.memory_space<vmem>>, vector<128x128xf32>,
    %c1_i32 = arith.constant 1 : i32
    %10 = arith.cmpi eq, %arg1, %c1_i32 : i32
    %11 = arith.extui %10 : i1 to i32
    %c0_i32_8 = arith.constant 0 : i32
    %12 = arith.cmpi ne, %11, %c0_i32_8 : i32
    scf.if %12 {
      %c0_9 = arith.constant 0 : index
      %c0_10 = arith.constant 0 : index
      %13 = vector.load %arg6[%c0_9, %c0_10] : memref<128x128xf32, #tpu.memory_space<vmem>>, vector<128x128xf32>
      %c0_11 = arith.constant 0 : index
      %c0_12 = arith.constant 0 : index
      %14 = vector.load %arg4[%c0_11, %c0_12] : memref<128x1xf32, #tpu.memory_space<vmem>>, vector<128x1xf32>
      %15 = vector.broadcast %14 : vector<128x1xf32> to vector<128x128xf32>
      %16 = arith.mulf %13, %15 : vector<128x128xf32>
      %17 = arith.truncf %16 : vector<128x128xf32> to vector<128x128xbf16>
      %c0_13 = arith.constant 0 : index
      %c0_14 = arith.constant 0 : index
      %18 = vector.load %arg5[%c0_13, %c0_14] : memref<128x128xbf16, #tpu.memory_space<vmem>>, vector<128x128xbf16>
      tpu.vector_store %arg5[%c0_13, %c0_14], %17 {strides = array<i32>} : memref<128x128xbf16, #tpu.memory_space<vmem>>, vector<128x128xbf16>,
    } else {
    }
    return
  }
  func.func @transform_0(%arg0: i32, %arg1: i32) -> (i32, i32) {
    %c0_i32 = arith.constant 0 : i32
    return %arg0, %arg1 : i32, i32
  }
  func.func @transform_1(%arg0: i32, %arg1: i32) -> (i32, i32) {
    %c0_i32 = arith.constant 0 : i32
    %c0_i32_0 = arith.constant 0 : i32
    return %arg1, %c0_i32 : i32, i32
  }
  func.func @transform_2(%arg0: i32, %arg1: i32) -> (i32, i32) {
    %c0_i32 = arith.constant 0 : i32
    %c0_i32_0 = arith.constant 0 : i32
    return %arg0, %c0_i32 : i32, i32
  }
  func.func @transform_3(%arg0: i32, %arg1: i32) -> (i32, i32) {
    %c0_i32 = arith.constant 0 : i32
    %c0_i32_0 = arith.constant 0 : i32
    return %arg0, %c0_i32 : i32, i32
  }
}

</mosaic_0001>

<bundles_post_ra>
// kernel: tpu_custom_call.1
= control target key start
LH: loop header
LB: loop body
LE: loop exit
PB: predicated region body
PF: predicated region fallthrough
CT: control target
= control target key end

     0   :  { %s1736_s0 = inlined_call_operand.vmem [shape: s8[256,512], index: 0, kind: input, shape index: {}]   ;;  %s1737_s1 = inlined_call_operand.hbm [shape: bf16[512,128], index: 1, kind: input, shape index: {}]   ;;  %s1738_s2 = inlined_call_operand.vmem [shape: f32[256,1], index: 2, kind: input, shape index: {}]   ;;  %s1739_s3 = inlined_call_operand.hbm [shape: bf16[256,128], index: 3, kind: output, shape index: {}]  }
   0x1   :  { %1743 = sst [smem:[#allocation16_spill]] %s1736_s0 }
   0x2   :  { %8 = vsyncpa [#allocation5], 0 }
   0x3   :  { %10 = vsyncpa [#allocation5 + $0x1], 0 }
   0x4   :  { %11 = vsyncpa [#allocation6], 0 }
   0x5   :  { %13 = vsyncpa [#allocation6 + $0x1], 0  ;;  %s1454_s12 = smov 0   ;;  %s1456_s13 = smov 0  }
   0x6   :  { %s1458_s14 = smov 0   ;;  %s1460_s15 = smov 0  }
   0x7   :  { %s1462_s16 = smov 0   ;;  %s1464_s17 = smov 0  }
   0x8   :  { %s1466_s18 = smov 0   ;;  %s1468_s19 = smov 0  }
   0x9   :  { %s1470_s20 = smov 0   ;;  %s1472_s21 = smov 0  }
   0xa   :  { %s1474_s22 = smov 0   ;;  %s1476_s23 = smov 0  }
   0xb   :  { %s1478_s24 = smov 0  }
   0xc LB: > { %1744 = sst [smem:[#allocation10_spill]] %s1422_s23  ;;  %s967_s25 = sadd.s32 4294967295, %s1426_s24   ;;  %s1426_s24 = sphi %s1478_s24, %s19_s24   ;;  %s1422_s23 = sphi %s1476_s23, %s1763_s23   ;;  %s1418_s22 = sphi %s1474_s22, %s1774_s22   ;;  %s1414_s21 = sphi %s1472_s21, %s1761_s21   ;;  %s1410_s20 = sphi %s1470_s20, %s1773_s20   ;;  %s1406_s19 = sphi %s1468_s19, %s1772_s19   ;;  %s1402_s18 = sphi %s1466_s18, %s1771_s18   ;;  %s1398_s17 = sphi %s1464_s17, %s1770_s17   ;;  %s1394_s16 = sphi %s1462_s16, %s1769_s16   ;;  %s1390_s15 = sphi %s1460_s15, %s1768_s15   ;;  %s1386_s14 = sphi %s1458_s14, %s1767_s14   ;;  %s1382_s13 = sphi %s1456_s13, %s1766_s13   ;;  %s1378_s12 = sphi %s1454_s12, %s1765_s12  }
   0xd   : > { %s28_s27 = sadd.s32 1, %s1418_s22  ;;  %s31_s28 = sadd.s32 1, %s1422_s23 }
   0xe   : > { %p29_p0 = scmp.ge.s32.totalorder %s28_s27, 2  ;;  %s40_s29 = sadd.s32 1, %s1406_s19 }
   0xf   : > { %p47_p1 = scmp.ne.s32.totalorder %s1406_s19, %s1402_s18  ;;  %p48_p2 = scmp.eq.s32.totalorder %s1426_s24, 0 }
  0x10   : > { %s1776_s27 = smov (%p29_p0, %s28_s27), 0  ;;  %s1778_s28 = smov (!%p29_p0, %s31_s28), %s1422_s23 }
  0x11   : > { %1745 = sst [smem:[#allocation11_spill]] %s1776_s27  ;;  %s36_s30 = ssub.s32 %s1418_s22, %s1776_s27 }
  0x12   : > { %p1532_p3 = por %p48_p2, %p47_p1  ;;  %p33_p4 = scmp.ge.s32.totalorder %s1778_s28, 2 }
  0x13   : > { %p64_p5 = scmp.eq.s32.totalorder %s36_s30, 0  ;;  %s66_s5 = sadd.s32 1, %s1398_s17 }
  0x14   : > { %p73_p6 = scmp.ne.s32.totalorder %s1398_s17, %s1394_s16  ;;  %s1780_s28 = smov (%p33_p4, %s1778_s28), 0 }
  0x15   : > { %1747 = sst [smem:[#allocation12_spill]] %s1780_s28  ;;  %s35_s7 = ssub.s32 %s1422_s23, %s1780_s28 }
  0x16   : > { %s1542_s6 = scalar_select %p64_p5, %s1398_s17, %s66_s5  }
  0x17   : > { %p1546_p7 = por %p73_p6, %p48_p2  ;;  %s37_s9 = sor.u32 %s36_s30, %s35_s7 }
  0x18   : > { %1748 = sst [smem:[#allocation13_spill]] %s1542_s6  ;;  %p79_p8 = scmp.ne.s32.totalorder %s1394_s16, %s1390_s15 }
  0x19   : > { %p38_p9 = scmp.eq.s32.totalorder %s37_s9, 0  ;;  %p80_p10 = scmp.eq.s32.totalorder %s967_s25, 0 }
  0x1a   : > { %p116_p11 = scmp.eq.s32.totalorder %s35_s7, 0  ;;  %s118_s10 = sadd.s32 1, %s1386_s14 }
  0x1b   : > { %s1556_s11 = scalar_select %p38_p9, %s1406_s19, %s40_s29  }
  0x1c   : > { %p1558_p12 = por %p80_p10, %p79_p8  ;;  %p128_p13 = scmp.ne.s32.totalorder %s1386_s14, %s1382_s13 }
  0x1d   : > { %1750 = sst [smem:[#allocation14_spill]] %s1556_s11  ;;  %p129_p0 = scmp.eq.s32.totalorder %s967_s25, 3 }
  0x1e   : > { %s1565_s5 = scalar_select %p116_p11, %s1386_s14, %s118_s10  }
  0x1f   : > { %p134_p1 = scmp.ne.s32.totalorder %s1382_s13, %s1378_s12  ;;  %s1753_s28 = sadd.s32 4294967294, %s1426_s24  }
  0x20   : > { %1752 = sst [smem:[#allocation15_spill]] %s1565_s5  ;;  %p135_p2 = scmp.eq.s32.totalorder %s1753_s28, 3 }
  0x21   : > { %p1573_p4 = por %p129_p0, %p128_p13  ;;  %p970_p6 = scmp.ge.s32.totalorder %s1426_s24, 4 }
  0x22   : > { %p1577_p5 = por %p135_p2, %p134_p1 }
  0x23   : > { %151 = sbr.rel (%p970_p6) target bundleno = 64 (0x40), region = 16 }
  0x28   : > { %154 = sbr.rel (!%p1532_p3) target bundleno = 58 (0x3a), region = 20  ;;  %s156_s25 = sand.u32 (%p1532_p3), 1, %s1406_s19  }
  0x29   : > { %s973_s29 = sshll.u32 (%p1532_p3), %s1418_s22, 1  ;;  %s971_s28 = sshll.u32 (%p1532_p3), %s156_s25, 6 }
  0x2a   : > { %s1056_s7 = sshll.u32 (%p1532_p3), %s1422_s23, 4  ;;  %s1756_s0 = sld [smem:[#allocation16_spill]] (%p1532_p3) }
  0x2b   : > { %s162_s9 = sadd.s32 (%p1532_p3), %s1056_s7, %s973_s29  ;;  %s158_s5 = scalar_lea.vmem (%p1532_p3), [#allocation3], %s971_s28 }
  0x2c   : > { %s975_s10 = sshll.u32 (%p1532_p3), %s162_s9, 3 }
  0x30   : > { %s164_s6 = scalar_lea.vmem %s1756_s0, %s975_s10 }
  0x31   : > { %v177_v0 = vld [vmem:[%s164_s6] sm:$0xff]  ;;  %v179_v1 = vld [vmem:[%s164_s6 + $0x8] sm:$0xff] }
  0x32   : > { %v181_v2 = vld [vmem:[%s164_s6 + $0x20] sm:$0xff]  ;;  %178 = vst [vmem:[%s158_s5] sm:$0xff] %v177_v0  ;;  %v183_v3 = vld [vmem:[%s164_s6 + $0x28] sm:$0xff] }
  0x33   : > { %180 = vst [vmem:[%s158_s5 + $0x8] sm:$0xff] %v179_v1  ;;  %v185_v4 = vld [vmem:[%s164_s6 + $0x40] sm:$0xff]  ;;  %v187_v5 = vld [vmem:[%s164_s6 + $0x48] sm:$0xff] }
  0x34   : > { %182 = vst [vmem:[%s158_s5 + $0x10] sm:$0xff] %v181_v2  ;;  %v189_v6 = vld [vmem:[%s164_s6 + $0x60] sm:$0xff]  ;;  %v191_v7 = vld [vmem:[%s164_s6 + $0x68] sm:$0xff] }
  0x35   : > { %184 = vst [vmem:[%s158_s5 + $0x18] sm:$0xff] %v183_v3 }
  0x36   : > { %186 = vst [vmem:[%s158_s5 + $0x20] sm:$0xff] %v185_v4 }
  0x37   : > { %188 = vst [vmem:[%s158_s5 + $0x28] sm:$0xff] %v187_v5 }
  0x38   : > { %190 = vst [vmem:[%s158_s5 + $0x30] sm:$0xff] %v189_v6 }
  0x39   : > { %192 = vst [vmem:[%s158_s5 + $0x38] sm:$0xff] %v191_v7 }
  0x3a PF: > { %s199_s27 = sand.u32 1, %s1398_s17   ;;  %s1057_s4 = sshll.u32 %s1418_s22, 7 }
  0x3b   : > { %s976_s11 = sshll.u32 %s199_s27, 7  ;;  %s208_s28 = scalar_lea.hbm %s1737_s1, %s1057_s4 }
  0x3c   : > { %s209_s7 = sshll.u32 %s208_s28, 4  ;;  %s203_s9 = scalar_lea.vmem [#allocation4], %s976_s11  ;;  %s210_s7 = int_to_ptr.hbm [resolvable:$true] %s209_s7 }
  0x3d   : > { %s211_s10 = sshll.u32 %s203_s9, 4  ;;  %s200_s6 = scalar_lea.sflag [#allocation5], %s199_s27  ;;  %s212_s10 = int_to_ptr.vmem [resolvable:$true] %s211_s10 }
  0x3e   : > { %s1428_s0 = smov 64   ;;  %s1429_s23 = smov 4  }
  0x3f   : > { %1138 = dma.hbm_to_vmem [thread:$0]  (%p1546_p7), %s210_s7, 2048, %s212_s10, %s200_s6, %s1428_s0, %s1428_s0, %s1429_s23  }
  0x40 PF: > { %p979_p3 = scmp.ge.s32.totalorder %s1426_s24, 1  ;;  %p228_p8 = scmp.lt.s32.totalorder %s1426_s24, 5 }
  0x42   : > { %p229_p9 = pnand %p979_p3, %p228_p8 }
  0x43   : > { %s235_s5 = sand.u32 (!%p229_p9), 1, %s1402_s18   ;;  %s241_s4 = sand.u32 (!%p229_p9), 1, %s1394_s16  }
  0x44   : > { %232 = sbr.rel (%p229_p9) target bundleno = 505 (0x1f9), region = 51  ;;  %s980_s11 = sshll.u32 (!%p229_p9), %s235_s5, 6 }
  0x45   : > { %s981_s25 = sshll.u32 (!%p229_p9), %s241_s4, 7  ;;  %s1601_s29 = scalar_lea.vmem (!%p229_p9), [#allocation3], %s980_s11 }
  0x46   : > { %s242_s27 = scalar_lea.sflag (!%p229_p9), [#allocation5], %s241_s4  ;;  %s1603_s28 = scalar_lea.vmem (!%p229_p9), [#allocation4], %s981_s25 }
  0x49   : > { %1369 = dma.done.wait (%p1558_p12), %s242_s27, 2048  }
  0x4a   : > { %1371 = vsyncadd (%p1558_p12), %s242_s27, 4294965248  ;;  %s275_s0 = sand.u32 1, %s1382_s13   ;;  %s983_s23 = sshll.u32 %s1414_s21, 4 }
  0x4b   : > { %s982_s18 = sshll.u32 %s275_s0, 6  ;;  %p282_p7 = scmp.lt.s32.totalorder %s983_s23, 31 }
  0x4c   : > { %s1618_s6 = scalar_lea.vmem [#allocation7], %s982_s18  ;;  %p985_p10 = scmp.ne.s32.totalorder %s1410_s20, 0 }
  0x4d   : > { %s1782_s23 = smov (!%p282_p7, %s983_s23), 31 }
  0x4e   : > { %s984_s8 = sshll.u32 %s1782_s23, 3  ;;  %291 = sbr.rel (%p985_p10) target bundleno = 100 (0x64), region = 63 }
  0x4f   : > { %s1616_s10 = scalar_lea.vmem %s1738_s2, %s984_s8 }
  0x53   : > { %v1430_v8 = vmov 0.0  }
  0x54   : > { %292 = vst [vmem:[#allocation2 + $0x30] sm:$0xff] %v1430_v8 }
  0x55   : > { %293 = vst [vmem:[#allocation2] sm:$0xff] %v1430_v8 }
  0x56   : > { %294 = vst [vmem:[#allocation2 + $0x58] sm:$0xff] %v1430_v8 }
  0x57   : > { %295 = vst [vmem:[#allocation2 + $0x18] sm:$0xff] %v1430_v8 }
  0x58   : > { %296 = vst [vmem:[#allocation2 + $0x50] sm:$0xff] %v1430_v8 }
  0x59   : > { %297 = vst [vmem:[#allocation2 + $0x68] sm:$0xff] %v1430_v8 }
  0x5a   : > { %298 = vst [vmem:[#allocation2 + $0x8] sm:$0xff] %v1430_v8 }
  0x5b   : > { %299 = vst [vmem:[#allocation2 + $0x48] sm:$0xff] %v1430_v8 }
  0x5c   : > { %300 = vst [vmem:[#allocation2 + $0x40] sm:$0xff] %v1430_v8 }
  0x5d   : > { %301 = vst [vmem:[#allocation2 + $0x20] sm:$0xff] %v1430_v8 }
  0x5e   : > { %302 = vst [vmem:[#allocation2 + $0x10] sm:$0xff] %v1430_v8 }
  0x5f   : > { %303 = vst [vmem:[#allocation2 + $0x38] sm:$0xff] %v1430_v8 }
  0x60   : > { %304 = vst [vmem:[#allocation2 + $0x60] sm:$0xff] %v1430_v8 }
  0x61   : > { %305 = vst [vmem:[#allocation2 + $0x70] sm:$0xff] %v1430_v8 }
  0x62   : > { %306 = vst [vmem:[#allocation2 + $0x78] sm:$0xff] %v1430_v8 }
  0x63   : > { %307 = vst [vmem:[#allocation2 + $0x28] sm:$0xff] %v1430_v8 }
  0x64 PF: > { %v1065_v9 = vld [vmem:[%s1603_s28 + $0x38] sm:$0xff]  ;;  %v1064_v11 = vld [vmem:[%s1603_s28 + $0x30] sm:$0xff]  ;;  %v1063_v13 = vld [vmem:[%s1603_s28 + $0x28] sm:$0xff]  ;;  %p1050_p11 = scmp.ne.s32.totalorder %s1410_s20, 1 }
  0x65   : > { %v1073_v10 = vld [vmem:[%s1603_s28 + $0x78] sm:$0xff]  ;;  %540 = vmatpush.bf16.msra.mxu0 %v1065_v9  ;;  %1122 = vmatpush.bf16.msra.mxu2 %v1065_v9  ;;  %v1072_v12 = vld [vmem:[%s1603_s28 + $0x70] sm:$0xff]  ;;  %v1071_v14 = vld [vmem:[%s1603_s28 + $0x68] sm:$0xff] }
  0x66   : > { %589 = vmatpush.bf16.msra.mxu1 %v1073_v10  ;;  %1130 = vmatpush.bf16.msra.mxu3 %v1073_v10  ;;  %v1062_v15 = vld [vmem:[%s1603_s28 + $0x20] sm:$0xff]  ;;  %v1061_v17 = vld [vmem:[%s1603_s28 + $0x18] sm:$0xff]  ;;  %v1060_v19 = vld [vmem:[%s1603_s28 + $0x10] sm:$0xff] }
  0x67   : > { %v1070_v16 = vld [vmem:[%s1603_s28 + $0x60] sm:$0xff]  ;;  %v1069_v18 = vld [vmem:[%s1603_s28 + $0x58] sm:$0xff]  ;;  %v1068_v22 = vld [vmem:[%s1603_s28 + $0x50] sm:$0xff] }
  0x68   : > { %v324_v20 = vld [vmem:[%s1601_s29] sm:$0xff]  ;;  %v325_v23 = vld [vmem:[%s1601_s29 + $0x8] sm:$0xff]  ;;  %v326_v5 = vld [vmem:[%s1601_s29 + $0x10] sm:$0xff] }
  0x69   : > { %541 = vmatpush.bf16.msra.mxu0 %v1064_v11  ;;  %1123 = vmatpush.bf16.msra.mxu2 %v1064_v11  ;;  %v328_v21 = vld [vmem:[%s1601_s29 + $0x20] sm:$0xff]  ;;  %v329_v24 = vld [vmem:[%s1601_s29 + $0x28] sm:$0xff]  ;;  %v332_v25 = vunpack.c.0.s8 %v324_v20  ;;  %v334_v26 = vunpack.c.1.s8 %v324_v20  ;;  %v333_v30 = vunpack.c.0.s8 %v325_v23  ;;  %v335_v31 = vunpack.c.1.s8 %v325_v23  ;;  %v330_v6 = vld [vmem:[%s1601_s29 + $0x30] sm:$0xff] }
  0x6a   : > { %590 = vmatpush.bf16.msra.mxu1 %v1072_v12  ;;  %1131 = vmatpush.bf16.msra.mxu3 %v1072_v12  ;;  %v348_v27 = vunpack.c.0.s8 %v328_v21  ;;  %v350_v28 = vunpack.c.1.s8 %v328_v21  ;;  %v1059_v29 = vld [vmem:[%s1603_s28 + $0x8] sm:$0xff]  ;;  %v349_v32 = vunpack.c.0.s8 %v329_v24  ;;  %v351_v33 = vunpack.c.1.s8 %v329_v24  ;;  %v1058_v39 = vld [vmem:[%s1603_s28] sm:$0xff]  ;;  %v327_v7 = vld [vmem:[%s1601_s29 + $0x18] sm:$0xff] }
  0x6b   : > { %v1067_v34 = vld [vmem:[%s1603_s28 + $0x48] sm:$0xff]  ;;  %v364_v35 = vcvt.s32.f32 %v332_v25  ;;  %v366_v36 = vcvt.s32.f32 %v334_v26  ;;  %v365_v40 = vcvt.s32.f32 %v333_v30  ;;  %v367_v41 = vcvt.s32.f32 %v335_v31  ;;  %v1066_v44 = vld [vmem:[%s1603_s28 + $0x40] sm:$0xff]  ;;  %v331_v8 = vld [vmem:[%s1601_s29 + $0x38] sm:$0xff] }
  0x6c   : > { %v380_v37 = vcvt.s32.f32 %v348_v27  ;;  %v382_v38 = vcvt.s32.f32 %v350_v28  ;;  %v381_v42 = vcvt.s32.f32 %v349_v32  ;;  %v383_v43 = vcvt.s32.f32 %v351_v33 }
  0x6d   : > { %542 = vmatpush.bf16.msra.mxu0 %v1063_v13  ;;  %1124 = vmatpush.bf16.msra.mxu2 %v1063_v13  ;;  %v396_v45 = vpack.c.bf16 %v366_v36, %v364_v35  ;;  %v397_v47 = vpack.c.bf16 %v367_v41, %v365_v40  ;;  %v336_v49 = vunpack.c.2.s8 %v324_v20  ;;  %v338_v50 = vunpack.c.3.s8 %v324_v20 }
  0x6e   : > { %591 = vmatpush.bf16.msra.mxu1 %v1071_v14  ;;  %1132 = vmatpush.bf16.msra.mxu3 %v1071_v14  ;;  %v404_v46 = vpack.c.bf16 %v382_v38, %v380_v37  ;;  %v405_v48 = vpack.c.bf16 %v383_v43, %v381_v42  ;;  %v352_v51 = vunpack.c.2.s8 %v328_v21  ;;  %v354_v52 = vunpack.c.3.s8 %v328_v21 }
  0x6f   : > { %v337_v53 = vunpack.c.2.s8 %v325_v23  ;;  %v339_v54 = vunpack.c.3.s8 %v325_v23  ;;  %v353_v55 = vunpack.c.2.s8 %v329_v24  ;;  %v355_v56 = vunpack.c.3.s8 %v329_v24 }
  0x70   : > { %v368_v57 = vcvt.s32.f32 %v336_v49  ;;  %v370_v58 = vcvt.s32.f32 %v338_v50  ;;  %v384_v59 = vcvt.s32.f32 %v352_v51  ;;  %v386_v60 = vcvt.s32.f32 %v354_v52  ;;  %v308_v50 = vld [vmem:[#allocation2 + $0x30] sm:$0xff] }
  0x71   : > { %543 = vmatpush.bf16.msra.mxu0 %v1062_v15  ;;  %1125 = vmatpush.bf16.msra.mxu2 %v1062_v15  ;;  %v369_v61 = vcvt.s32.f32 %v337_v53  ;;  %v371_v62 = vcvt.s32.f32 %v339_v54  ;;  %v385_v63 = vcvt.s32.f32 %v353_v55  ;;  %v387_v0 = vcvt.s32.f32 %v355_v56  ;;  %v316_v55 = vld [vmem:[#allocation2 + $0x40] sm:$0xff] }
  0x72   : > { %592 = vmatpush.bf16.msra.mxu1 %v1070_v16  ;;  %1133 = vmatpush.bf16.msra.mxu3 %v1070_v16  ;;  %v398_v1 = vpack.c.bf16 %v370_v58, %v368_v57  ;;  %v406_v2 = vpack.c.bf16 %v386_v60, %v384_v59  ;;  %v340_v9 = vunpack.c.0.s8 %v326_v5  ;;  %v342_v10 = vunpack.c.1.s8 %v326_v5  ;;  %v309_v59 = vld [vmem:[#allocation2] sm:$0xff] }
  0x73   : > { %v399_v3 = vpack.c.bf16 %v371_v62, %v369_v61  ;;  %v407_v4 = vpack.c.bf16 %v387_v0, %v385_v63  ;;  %v356_v11 = vunpack.c.0.s8 %v330_v6  ;;  %v358_v12 = vunpack.c.1.s8 %v330_v6 }
  0x74   : > { %v341_v13 = vunpack.c.0.s8 %v327_v7  ;;  %v343_v14 = vunpack.c.1.s8 %v327_v7  ;;  %v357_v15 = vunpack.c.0.s8 %v331_v8  ;;  %v359_v16 = vunpack.c.1.s8 %v331_v8 }
  0x75   : > { %544 = vmatpush.bf16.msra.mxu0 %v1061_v17  ;;  %1126 = vmatpush.bf16.msra.mxu2 %v1061_v17  ;;  %v372_v17 = vcvt.s32.f32 %v340_v9  ;;  %v390_v20 = vcvt.s32.f32 %v358_v12  ;;  %v346_v30 = vunpack.c.3.s8 %v326_v5  ;;  %v360_v31 = vunpack.c.2.s8 %v330_v6 }
  0x76   : > { %593 = vmatpush.bf16.msra.mxu1 %v1069_v18  ;;  %1134 = vmatpush.bf16.msra.mxu3 %v1069_v18  ;;  %v374_v18 = vcvt.s32.f32 %v342_v10  ;;  %v373_v21 = vcvt.s32.f32 %v341_v13  ;;  %v389_v23 = vcvt.s32.f32 %v357_v15  ;;  %v391_v24 = vcvt.s32.f32 %v359_v16  ;;  %v311_v15 = vld [vmem:[#allocation2 + $0x18] sm:$0xff] }
  0x77   : > { %v362_v32 = vunpack.c.3.s8 %v330_v6  ;;  %v345_v33 = vunpack.c.2.s8 %v327_v7  ;;  %v361_v35 = vunpack.c.2.s8 %v331_v8  ;;  %v363_v36 = vunpack.c.3.s8 %v331_v8 }
  0x78   : > { %v400_v25 = vpack.c.bf16 %v374_v18, %v372_v17  ;;  %v409_v28 = vpack.c.bf16 %v391_v24, %v389_v23  ;;  %v378_v38 = vcvt.s32.f32 %v346_v30 }
  0x79   : > { %545 = vmatpush.bf16.msra.mxu0 %v1060_v19  ;;  %1127 = vmatpush.bf16.msra.mxu2 %v1060_v19  ;;  %v388_v19 = vcvt.s32.f32 %v356_v11  ;;  %v394_v40 = vcvt.s32.f32 %v362_v32  ;;  %v377_v41 = vcvt.s32.f32 %v345_v33  ;;  %v393_v43 = vcvt.s32.f32 %v361_v35  ;;  %v318_v11 = vld [vmem:[#allocation2 + $0x10] sm:$0xff]  ;;  %v313_v35 = vld [vmem:[#allocation2 + $0x68] sm:$0xff] }
  0x7a   : > { %594 = vmatpush.bf16.msra.mxu1 %v1068_v22  ;;  %1135 = vmatpush.bf16.msra.mxu3 %v1068_v22  ;;  %v375_v22 = vcvt.s32.f32 %v343_v14 }
  0x7b   : > { %v408_v26 = vpack.c.bf16 %v390_v20, %v388_v19 }
  0x7c   : > { %v401_v27 = vpack.c.bf16 %v375_v22, %v373_v21  ;;  %v319_v21 = vld [vmem:[#allocation2 + $0x38] sm:$0xff] }
  0x7d   : > { %546 = vmatpush.bf16.msra.mxu0 %v1059_v29  ;;  %1128 = vmatpush.bf16.msra.mxu2 %v1059_v29  ;;  %v344_v29 = vunpack.c.2.s8 %v326_v5  ;;  %v310_v5 = vld [vmem:[#allocation2 + $0x58] sm:$0xff] }
  0x7e   : > { %595 = vmatpush.bf16.msra.mxu1 %v1067_v34  ;;  %1136 = vmatpush.bf16.msra.mxu3 %v1067_v34  ;;  %v347_v34 = vunpack.c.3.s8 %v327_v7 }
  0x7f   : > { %v376_v37 = vcvt.s32.f32 %v344_v29 }
  0x80   : > { %v379_v42 = vcvt.s32.f32 %v347_v34 }
  0x81   : > { %547 = vmatpush.bf16.msra.mxu0 %v1058_v39  ;;  %1129 = vmatpush.bf16.msra.mxu2 %v1058_v39  ;;  %v392_v39 = vcvt.s32.f32 %v360_v31  ;;  %v320_v31 = vld [vmem:[#allocation2 + $0x60] sm:$0xff] }
  0x82   : > { %596 = vmatpush.bf16.msra.mxu1 %v1066_v44  ;;  %1137 = vmatpush.bf16.msra.mxu3 %v1066_v44  ;;  %v395_v44 = vcvt.s32.f32 %v363_v36 }
  0x84   : > { %548 = vmatmul.bf16.vlgmr.msra.gmra.mxu0 %v396_v45  ;;  %568 = vmatmul.bf16.vlgmr.msra.gmra.mxu2 %v404_v46  ;;  %v402_v45 = vpack.c.bf16 %v378_v38, %v376_v37  ;;  %v410_v46 = vpack.c.bf16 %v394_v40, %v392_v39 }
  0x85   : > { %597 = vmatmul.bf16.vlgmr.msra.gmra.mxu1 %v397_v47  ;;  %617 = vmatmul.bf16.vlgmr.msra.gmra.mxu3 %v405_v48  ;;  %v403_v47 = vpack.c.bf16 %v379_v42, %v377_v41  ;;  %v411_v48 = vpack.c.bf16 %v395_v44, %v393_v43  ;;  %v321_v41 = vld [vmem:[#allocation2 + $0x70] sm:$0xff] }
  0x94   : > { %553 = vmatmul.bf16.gmra.mxu0 %v398_v1  ;;  %573 = vmatmul.bf16.gmra.mxu2 %v406_v2  ;;  %v317_v1 = vld [vmem:[#allocation2 + $0x20] sm:$0xff] }
  0x95   : > { %602 = vmatmul.bf16.gmra.mxu1 %v399_v3  ;;  %622 = vmatmul.bf16.gmra.mxu3 %v407_v4 }
  0xa4   : > { %558 = vmatmul.bf16.gmra.mxu0 %v400_v25  ;;  %578 = vmatmul.bf16.gmra.mxu2 %v408_v26  ;;  %v312_v25 = vld [vmem:[#allocation2 + $0x50] sm:$0xff] }
  0xa5   : > { %607 = vmatmul.bf16.gmra.mxu1 %v401_v27  ;;  %627 = vmatmul.bf16.gmra.mxu3 %v409_v28 }
  0xb4   : > { %563 = vmatmul.bf16.gmra.mxu0 %v402_v45  ;;  %583 = vmatmul.bf16.gmra.mxu2 %v410_v46  ;;  %v314_v45 = vld [vmem:[#allocation2 + $0x8] sm:$0xff] }
  0xb5   : > { %612 = vmatmul.bf16.gmra.mxu1 %v403_v47  ;;  %632 = vmatmul.bf16.gmra.mxu3 %v411_v48 }
 0x101   : > { %v549_v49 = vpop.f32.mrf.mxu0 }
 0x102   : > { %v598_v51 = vpop.f32.mrf.mxu1 }
 0x103   : > { %v599_v52 = vadd.f32 %v598_v51, %v549_v49  ;;  %v322_v51 = vld [vmem:[#allocation2 + $0x78] sm:$0xff] }
 0x105   : > { %v638_v53 = vadd.f32 %v599_v52, %v308_v50 }
 0x107   : > { %654 = vst [vmem:[#allocation2 + $0x30] sm:$0xff] %v638_v53  ;;  %v569_v54 = vpop.f32.mrf.mxu2 }
 0x108   : > { %v618_v56 = vpop.f32.mrf.mxu3 }
 0x109   : > { %v619_v57 = vadd.f32 %v618_v56, %v569_v54  ;;  %v551_v58 = vpop.f32.mrf.mxu0 }
 0x10a   : > { %v600_v60 = vpop.f32.mrf.mxu1 }
 0x10b   : > { %v646_v61 = vadd.f32 %v619_v57, %v316_v55  ;;  %v601_v62 = vadd.f32 %v600_v60, %v551_v58  ;;  %v315_v55 = vld [vmem:[#allocation2 + $0x48] sm:$0xff] }
 0x10d   : > { %662 = vst [vmem:[#allocation2 + $0x40] sm:$0xff] %v646_v61  ;;  %v639_v63 = vadd.f32 %v601_v62, %v309_v59  ;;  %v323_v61 = vld [vmem:[#allocation2 + $0x28] sm:$0xff] }
 0x10f   : > { %655 = vst [vmem:[#allocation2] sm:$0xff] %v639_v63  ;;  %v571_v0 = vpop.f32.mrf.mxu2 }
 0x110   : > { %v620_v2 = vpop.f32.mrf.mxu3 }
 0x111   : > { %v621_v3 = vadd.f32 %v620_v2, %v571_v0  ;;  %v554_v4 = vpop.f32.mrf.mxu0 }
 0x112   : > { %v603_v6 = vpop.f32.mrf.mxu1 }
 0x113   : > { %v647_v7 = vadd.f32 %v621_v3, %v317_v1  ;;  %v604_v8 = vadd.f32 %v603_v6, %v554_v4 }
 0x115   : > { %663 = vst [vmem:[#allocation2 + $0x20] sm:$0xff] %v647_v7  ;;  %v640_v9 = vadd.f32 %v604_v8, %v310_v5 }
 0x117   : > { %656 = vst [vmem:[#allocation2 + $0x58] sm:$0xff] %v640_v9  ;;  %v574_v10 = vpop.f32.mrf.mxu2 }
 0x118   : > { %v623_v12 = vpop.f32.mrf.mxu3 }
 0x119   : > { %v624_v13 = vadd.f32 %v623_v12, %v574_v10  ;;  %v556_v14 = vpop.f32.mrf.mxu0 }
 0x11a   : > { %v605_v16 = vpop.f32.mrf.mxu1 }
 0x11b   : > { %v648_v17 = vadd.f32 %v624_v13, %v318_v11  ;;  %v606_v18 = vadd.f32 %v605_v16, %v556_v14 }
 0x11d   : > { %664 = vst [vmem:[#allocation2 + $0x10] sm:$0xff] %v648_v17  ;;  %v641_v19 = vadd.f32 %v606_v18, %v311_v15 }
 0x11f   : > { %657 = vst [vmem:[#allocation2 + $0x18] sm:$0xff] %v641_v19  ;;  %v576_v20 = vpop.f32.mrf.mxu2 }
 0x120   : > { %v625_v22 = vpop.f32.mrf.mxu3 }
 0x121   : > { %v626_v23 = vadd.f32 %v625_v22, %v576_v20  ;;  %v559_v24 = vpop.f32.mrf.mxu0 }
 0x122   : > { %v608_v26 = vpop.f32.mrf.mxu1 }
 0x123   : > { %v649_v27 = vadd.f32 %v626_v23, %v319_v21  ;;  %v609_v28 = vadd.f32 %v608_v26, %v559_v24 }
 0x125   : > { %665 = vst [vmem:[#allocation2 + $0x38] sm:$0xff] %v649_v27  ;;  %v642_v29 = vadd.f32 %v609_v28, %v312_v25 }
 0x127   : > { %658 = vst [vmem:[#allocation2 + $0x50] sm:$0xff] %v642_v29  ;;  %v579_v30 = vpop.f32.mrf.mxu2 }
 0x128   : > { %v628_v32 = vpop.f32.mrf.mxu3 }
 0x129   : > { %v629_v33 = vadd.f32 %v628_v32, %v579_v30  ;;  %v561_v34 = vpop.f32.mrf.mxu0 }
 0x12a   : > { %v610_v36 = vpop.f32.mrf.mxu1 }
 0x12b   : > { %v650_v37 = vadd.f32 %v629_v33, %v320_v31  ;;  %v611_v38 = vadd.f32 %v610_v36, %v561_v34 }
 0x12d   : > { %666 = vst [vmem:[#allocation2 + $0x60] sm:$0xff] %v650_v37  ;;  %v643_v39 = vadd.f32 %v611_v38, %v313_v35 }
 0x12f   : > { %659 = vst [vmem:[#allocation2 + $0x68] sm:$0xff] %v643_v39  ;;  %v581_v40 = vpop.f32.mrf.mxu2 }
 0x130   : > { %v630_v42 = vpop.f32.mrf.mxu3 }
 0x131   : > { %v631_v43 = vadd.f32 %v630_v42, %v581_v40  ;;  %v564_v44 = vpop.f32.mrf.mxu0 }
 0x132   : > { %v613_v46 = vpop.f32.mrf.mxu1 }
 0x133   : > { %v651_v47 = vadd.f32 %v631_v43, %v321_v41  ;;  %v614_v48 = vadd.f32 %v613_v46, %v564_v44 }
 0x135   : > { %667 = vst [vmem:[#allocation2 + $0x70] sm:$0xff] %v651_v47  ;;  %v644_v49 = vadd.f32 %v614_v48, %v314_v45 }
 0x137   : > { %660 = vst [vmem:[#allocation2 + $0x8] sm:$0xff] %v644_v49  ;;  %v584_v50 = vpop.f32.mrf.mxu2 }
 0x138   : > { %v633_v52 = vpop.f32.mrf.mxu3 }
 0x139   : > { %v634_v53 = vadd.f32 %v633_v52, %v584_v50  ;;  %v566_v54 = vpop.f32.mrf.mxu0 }
 0x13a   : > { %v615_v56 = vpop.f32.mrf.mxu1 }
 0x13b   : > { %v652_v57 = vadd.f32 %v634_v53, %v322_v51  ;;  %v616_v58 = vadd.f32 %v615_v56, %v566_v54 }
 0x13d   : > { %668 = vst [vmem:[#allocation2 + $0x78] sm:$0xff] %v652_v57  ;;  %v645_v59 = vadd.f32 %v616_v58, %v315_v55 }
 0x13f   : > { %661 = vst [vmem:[#allocation2 + $0x48] sm:$0xff] %v645_v59  ;;  %v586_v60 = vpop.f32.mrf.mxu2 }
 0x140   : > { %v635_v62 = vpop.f32.mrf.mxu3 }
 0x141   : > { %v636_v63 = vadd.f32 %v635_v62, %v586_v60  ;;  %673 = sbr.rel (%p1050_p11) target bundleno = 489 (0x1e9), region = 67 }
 0x143   : > { %v653_v0 = vadd.f32 %v636_v63, %v323_v61 }
 0x145   : > { %669 = vst [vmem:[#allocation2 + $0x28] sm:$0xff] %v653_v0 }
 0x146   : > { %v694_v1 = vld [vmem:[%s1616_s10 + $0x20] sm:$0xff]  ;;  %v692_v2 = vld [vmem:[%s1616_s10 + $0x10] sm:$0xff]  ;;  %v1431_v4 = vmov 0   ;;  %v695_v5 = vld [vmem:[%s1616_s10 + $0x28] sm:$0xff] }
 0x147   : > { %v690_v3 = vld [vmem:[%s1616_s10] sm:$0xff]  ;;  %1259 = vset.pattern.permute.xlu2 %v1431_v4  ;;  %1258 = vset.pattern.permute.xlu1 %v1431_v4  ;;  %v693_v6 = vld [vmem:[%s1616_s10 + $0x18] sm:$0xff]  ;;  %v691_v7 = vld [vmem:[%s1616_s10 + $0x8] sm:$0xff] }
 0x148   : > { %1257 = vset.pattern.permute.xlu0 %v1431_v4  ;;  %728 = vperm.xlu2 %1259, %v694_v1   ;;  %v698_v8 = vld [vmem:[%s1616_s10 + $0x40] sm:$0xff]  ;;  %v697_v9 = vld [vmem:[%s1616_s10 + $0x38] sm:$0xff]  ;;  %v696_v10 = vld [vmem:[%s1616_s10 + $0x30] sm:$0xff] }
 0x149   : > { %718 = vperm.xlu1 %1258, %v692_v2   ;;  %708 = vperm.xlu0 %1257, %v690_v3   ;;  %v701_v11 = vld [vmem:[%s1616_s10 + $0x58] sm:$0xff]  ;;  %v700_v12 = vld [vmem:[%s1616_s10 + $0x50] sm:$0xff]  ;;  %v699_v13 = vld [vmem:[%s1616_s10 + $0x48] sm:$0xff] }
 0x14a   : > { %v704_v14 = vld [vmem:[%s1616_s10 + $0x70] sm:$0xff]  ;;  %v703_v15 = vld [vmem:[%s1616_s10 + $0x68] sm:$0xff]  ;;  %v702_v16 = vld [vmem:[%s1616_s10 + $0x60] sm:$0xff] }
 0x14b   : > { %v705_v17 = vld [vmem:[%s1616_s10 + $0x78] sm:$0xff]  ;;  %v678_v19 = vld [vmem:[#allocation2 + $0x50] sm:$0xff]  ;;  %v679_v20 = vld [vmem:[#allocation2 + $0x68] sm:$0xff] }
 0x14c   : > { %v676_v27 = vld [vmem:[#allocation2 + $0x58] sm:$0xff]  ;;  %v674_v28 = vld [vmem:[#allocation2 + $0x30] sm:$0xff]  ;;  %v675_v30 = vld [vmem:[#allocation2] sm:$0xff] }
 0x14d   : > { %v677_v29 = vld [vmem:[#allocation2 + $0x18] sm:$0xff]  ;;  %v681_v40 = vld [vmem:[#allocation2 + $0x48] sm:$0xff]  ;;  %v682_v47 = vld [vmem:[#allocation2 + $0x40] sm:$0xff] }
 0x14e   : > { %v680_v41 = vld [vmem:[#allocation2 + $0x8] sm:$0xff]  ;;  %v685_v48 = vld [vmem:[#allocation2 + $0x38] sm:$0xff]  ;;  %v684_v49 = vld [vmem:[#allocation2 + $0x10] sm:$0xff] }
 0x14f   : > { %v683_v50 = vld [vmem:[#allocation2 + $0x20] sm:$0xff]  ;;  %v687_v60 = vld [vmem:[#allocation2 + $0x70] sm:$0xff]  ;;  %v688_v4 = vld [vmem:[#allocation2 + $0x78] sm:$0xff] }
 0x150   : > { %733 = vperm.xlu2 %1259, %v695_v5   ;;  %v686_v61 = vld [vmem:[#allocation2 + $0x60] sm:$0xff]  ;;  %v689_v5 = vld [vmem:[#allocation2 + $0x28] sm:$0xff] }
 0x151   : > { %723 = vperm.xlu1 %1258, %v693_v6   ;;  %713 = vperm.xlu0 %1257, %v691_v7  }
 0x158   : > { %748 = vperm.xlu2 %1259, %v698_v8  }
 0x159   : > { %743 = vperm.xlu1 %1258, %v697_v9   ;;  %738 = vperm.xlu0 %1257, %v696_v10  }
 0x160   : > { %763 = vperm.xlu2 %1259, %v701_v11  }
 0x161   : > { %758 = vperm.xlu1 %1258, %v700_v12   ;;  %753 = vperm.xlu0 %1257, %v699_v13  }
 0x168   : > { %778 = vperm.xlu2 %1259, %v704_v14  }
 0x169   : > { %773 = vperm.xlu1 %1258, %v703_v15   ;;  %768 = vperm.xlu0 %1257, %v702_v16  }
 0x171   : > { %783 = vperm.xlu0 %1257, %v705_v17  }
 0x1a2   : > { %v729_v18 = vpop.permute.xlu2 %728 }
 0x1a3   : > { %v790_v21 = vmul.f32 %v729_v18, %v678_v19 }
 0x1aa   : > { %v734_v22 = vpop.permute.xlu2 %733 }
 0x1ab   : > { %v791_v23 = vmul.f32 %v734_v22, %v679_v20 }
 0x1ad   : > { %v1088_v24 = vpack.c.bf16 %v791_v23, %v790_v21 }
 0x1af   : > { %1116 = vst [vmem:[%s1618_s6 + $0x10] sm:$0xff] %v1088_v24  }
 0x1b2   : > { %v749_v39 = vpop.permute.xlu2 %748 }
 0x1b3   : > { %v794_v54 = vmul.f32 %v749_v39, %v682_v47 }
 0x1ba   : > { %v764_v51 = vpop.permute.xlu2 %763 }
 0x1bb   : > { %v719_v25 = vpop.permute.xlu1 %718  ;;  %v709_v26 = vpop.permute.xlu0 %708  ;;  %v797_v55 = vmul.f32 %v764_v51, %v685_v48 }
 0x1bc   : > { %v788_v31 = vmul.f32 %v719_v25, %v676_v27  ;;  %v786_v34 = vmul.f32 %v709_v26, %v674_v28 }
 0x1c2   : > { %v779_v3 = vpop.permute.xlu2 %778 }
 0x1c3   : > { %v724_v32 = vpop.permute.xlu1 %723  ;;  %v714_v33 = vpop.permute.xlu0 %713  ;;  %v800_v7 = vmul.f32 %v779_v3, %v688_v4 }
 0x1c4   : > { %v789_v35 = vmul.f32 %v724_v32, %v677_v29  ;;  %v787_v36 = vmul.f32 %v714_v33, %v675_v30 }
 0x1c6   : > { %v1083_v37 = vpack.c.bf16 %v789_v35, %v788_v31  ;;  %v1078_v38 = vpack.c.bf16 %v787_v36, %v786_v34 }
 0x1c8   : > { %1115 = vst [vmem:[%s1618_s6 + $0x8] sm:$0xff] %v1083_v37  }
 0x1c9   : > { %1079 = vst [vmem:[%s1618_s6] sm:$0xff] %v1078_v38  }
 0x1cb   : > { %v744_v42 = vpop.permute.xlu1 %743  ;;  %v739_v43 = vpop.permute.xlu0 %738 }
 0x1cc   : > { %v793_v44 = vmul.f32 %v744_v42, %v681_v40  ;;  %v792_v45 = vmul.f32 %v739_v43, %v680_v41 }
 0x1ce   : > { %v1093_v46 = vpack.c.bf16 %v793_v44, %v792_v45 }
 0x1d0   : > { %1117 = vst [vmem:[%s1618_s6 + $0x18] sm:$0xff] %v1093_v46  }
 0x1d3   : > { %v759_v52 = vpop.permute.xlu1 %758  ;;  %v754_v53 = vpop.permute.xlu0 %753 }
 0x1d4   : > { %v796_v56 = vmul.f32 %v759_v52, %v684_v49  ;;  %v795_v57 = vmul.f32 %v754_v53, %v683_v50 }
 0x1d6   : > { %v1103_v58 = vpack.c.bf16 %v797_v55, %v796_v56  ;;  %v1098_v59 = vpack.c.bf16 %v795_v57, %v794_v54 }
 0x1d8   : > { %1119 = vst [vmem:[%s1618_s6 + $0x28] sm:$0xff] %v1103_v58  }
 0x1d9   : > { %1118 = vst [vmem:[%s1618_s6 + $0x20] sm:$0xff] %v1098_v59  }
 0x1db   : > { %v774_v62 = vpop.permute.xlu1 %773  ;;  %v769_v63 = vpop.permute.xlu0 %768 }
 0x1dc   : > { %v799_v0 = vmul.f32 %v774_v62, %v687_v60  ;;  %v798_v1 = vmul.f32 %v769_v63, %v686_v61 }
 0x1de   : > { %v1108_v2 = vpack.c.bf16 %v799_v0, %v798_v1 }
 0x1e0   : > { %1120 = vst [vmem:[%s1618_s6 + $0x30] sm:$0xff] %v1108_v2  }
 0x1e3   : > { %v784_v6 = vpop.permute.xlu0 %783 }
 0x1e4   : > { %v801_v8 = vmul.f32 %v784_v6, %v689_v5 }
 0x1e6   : > { %v1113_v9 = vpack.c.bf16 %v801_v8, %v800_v7 }
 0x1e8   : > { %1121 = vst [vmem:[%s1618_s6 + $0x38] sm:$0xff] %v1113_v9  }
 0x1e9 PF: > { %s1074_s20 = sshll.u32 %s1414_s21, 6  ;;  %s847_s11 = sshll.u32 %s1618_s6, 4  ;;  %s848_s11 = int_to_ptr.vmem [resolvable:$true] %s847_s11 }
 0x1ea   : > { %s846_s4 = scalar_lea.hbm %s1739_s3, %s1074_s20  ;;  %s835_s29 = scalar_lea.sflag [#allocation6], %s275_s0 }
 0x1eb   : > { %s849_s25 = sshll.u32 %s846_s4, 4  ;;  %s1308_s21 = scalar_lea.hbm %s1739_s3, 128  ;;  %s850_s25 = int_to_ptr.hbm [resolvable:$true] %s849_s25 }
 0x1ec   : > { %s1302_s27 = sshra.s32 %s850_s25, 4  ;;  %s1303_s27 = int_to_ptr.hbm [resolvable:$true] %s1302_s27 }
 0x1ed   : > { %s1304_s28 = scalar_lea.hbm %s1303_s27, 64  ;;  %p1309_p1 = scmp.lt.s32.totalorder %s1303_s27, %s1739_s3 }
 0x1ee   : > { %p1305_p12 = scmp.ne.s32.totalorder %s1303_s27, %s1304_s28  ;;  %p1310_p2 = scmp.lt.s32.totalorder %s1308_s21, %s1304_s28 }
 0x1f0   : > { %p1306_p13 = pnand %p1305_p12, %p1573_p4  ;;  %p1311_p6 = por %p1310_p2, %p1309_p1 }
 0x1f2   : > { %p1307_p0 = pneg %p1306_p13 }
 0x1f4   : > { %p1312_p3 = pnand %p1311_p6, %p1307_p0 }
 0x1f6   : > { %1315 = shalt.err (!%p1312_p3)
}
 0x1f7   : > { %s1432_s0 = smov 64   ;;  %s1433_s9 = smov 4  }
 0x1f8   : > { %1140 = dma.vmem_to_hbm [thread:$0]  (%p1573_p4), %s848_s11, 1024, %s850_s25, %s835_s29, %s1432_s0, %s1432_s0, %s1433_s9  }
 0x1f9 PF: > { %p1146_p8 = scmp.ge.s32.totalorder %s1426_s24, 2  ;;  %s864_s10 = sand.u32 1, %s1378_s12  }
 0x1fa   : > { %s865_s6 = scalar_lea.sflag [#allocation6], %s864_s10 }
 0x1fb   : > { %p1143_p9 = pnand %p1146_p8, %p1577_p5 }
 0x1fd   : > { %p1144_p7 = pneg %p1143_p9 }
 0x1ff   : > { %1373 = dma.done.wait (%p1144_p7), %s865_s6, 1024  }
 0x200   : > { %1375 = vsyncadd (%p1144_p7), %s865_s6, 4294966272  ;;  %s19_s24 = sadd.s32 1, %s1426_s24   ;;  %s1758_s15 = sld [smem:[#allocation15_spill]] }
 0x201   : > { %p1692_p10 = scmp.ge.s32.totalorder %s19_s24, 6   ;;  %s1759_s26 = sld [smem:[#allocation13_spill]] }
 0x202   : > { %s1760_s5 = sld [smem:[#allocation14_spill]]  ;;  %s1765_s12 = smov %s1382_s13 }
 0x203   : > { %s1761_s21 = sld [smem:[#allocation10_spill]]  ;;  %s1766_s13 = smov %s1386_s14 }
 0x204   : > { %s1762_s30 = sld [smem:[#allocation11_spill]]  ;;  %s1771_s18 = smov %s1406_s19 }
 0x205   : > { %s1763_s23 = sld [smem:[#allocation12_spill]]  ;;  %s1773_s20 = smov %s1418_s22 }
 0x206   : > { %s1767_s14 = smov %s1758_s15  ;;  %s1768_s15 = smov %s1394_s16 }
 0x207   : > { %s1769_s16 = smov %s1398_s17  ;;  %s1770_s17 = smov %s1759_s26 }
 0x208   : > { %s1772_s19 = smov %s1760_s5  ;;  %18 = sbr.rel (!%p1692_p10) target bundleno = 12 (0xc), region = 119 }
 0x20a   : > { %s1774_s22 = smov %s1762_s30 }
 0x20d   :  { %871 = vsyncpa [#allocation5], 1 }
 0x20e   :  { %873 = vsyncpa [#allocation5 + $0x1], 1 }
 0x20f   :  { %874 = vsyncpa [#allocation6], 1 }
 0x210   :  { %876 = vsyncpa [#allocation6 + $0x1], 1 }

</bundles_post_ra>
